<compile_context>
chip_gen: v7x
topology: tpu7x:2x2x1
jax: 0.10.0
libtpu: 0.0.40
codegen_flags: <defaults>
</compile_context>

<pallas_src>
import functools

import jax
import jax.numpy as jnp
from jax.experimental import pallas as pl
from jax.experimental.pallas import tpu as pltpu


def _round_up(a, b):
    return ((a + b - 1) // b) * b


def _sublane_pack(dtype):
    # Native sublane packing factor per element width.
    return {4: 8, 2: 16, 1: 32}.get(jnp.dtype(dtype).itemsize, 8)


def _pick_compute_dtype(x_dtype):
    x_dtype = jnp.dtype(x_dtype)
    if x_dtype == jnp.dtype(jnp.bfloat16):
        kind = ""
        try:
            kind = jax.devices()[0].device_kind.lower()
        except Exception:
            pass
        # v5e and earlier lack bf16 VPU/EUP -> upcast; v6e/v7x stay bf16.
        if any(tag in kind for tag in ("v2", "v3", "v4", "v5")):
            return jnp.float32
        return jnp.bfloat16
    return jnp.float32


def _learnable_sigmoid_kernel(x_ref, slope_ref, o_ref, *, beta, compute_dtype):
    tile_n, lane = x_ref.shape            # static block shape
    sub = slope_ref.shape[0]              # packing factor (8 / 16 / 32)
    x = x_ref[...].astype(compute_dtype)
    slope = slope_ref[...].astype(compute_dtype)        # (sub, lane) full tile
    # (tile_n, lane) -> (tile_n//sub, sub, lane) is a tile-aligned relayout; the
    # (sub, lane) slope tile then broadcasts over the leading (vreg-index) axis
    # with no per-iteration sublane broadcast.
    z = x.reshape(tile_n // sub, sub, lane) * slope
    # sigmoid(z) = 0.5*tanh(0.5*z) + 0.5 : one EUP op, beta folded into the
    # constants so no extra VPU multiply for the beta scale.
    y = (0.5 * beta) * jnp.tanh(0.5 * z) + (0.5 * beta)
    o_ref[...] = y.reshape(tile_n, lane).astype(o_ref.dtype)


def learnable_sigmoid(x, slope, beta=1.0, *,
                      target_block_bytes=4 * 1024 * 1024, compute_dtype=None):
    """x: (..., in_features); slope: (in_features,). Returns beta*sigmoid(slope*x)."""
    orig_shape = x.shape
    f = orig_shape[-1]
    assert slope.shape == (f,), f"slope must be ({f},), got {slope.shape}"

    if compute_dtype is None:
        compute_dtype = _pick_compute_dtype(x.dtype)

    n = 1
    for d in orig_shape[:-1]:
        n *= d
    x2d = x.reshape(n, f)

    # ---- Lane-dense layout: lane width always a multiple of 128 -----------
    if f % 128 == 0:
        group, lane, rows = 1, f, n
        x_lane = x2d
        slope_vec = slope
    elif 128 % f == 0:
        # Pack (128 // f) consecutive rows into one 128-wide lane slab; pad the
        # row count up to the group multiple (sliced off afterwards).
        group = 128 // f
        n_grp = _round_up(n, group)
        if n_grp != n:
            x2d = jnp.pad(x2d, ((0, n_grp - n), (0, 0)))
        lane, rows = 128, n_grp // group
        x_lane = x2d.reshape(rows, lane)
        slope_vec = jnp.tile(slope, group)
    else:
        # Odd feature count: pad the feature axis to the next multiple of 128
        # so stores stay dense; padded lanes are discarded after the call.
        group = 1
        lane = _round_up(f, 128)
        rows = n
        x_lane = jnp.pad(x2d, ((0, 0), (0, lane - f)))
        slope_vec = jnp.pad(slope, (0, lane - f))

    # ---- Dtype-aware row padding & tile sizing -----------------------------
    pack = _sublane_pack(x.dtype)
    rows_padded = _round_up(rows, pack)
    if rows_padded != rows:
        x_lane = jnp.pad(x_lane, ((0, rows_padded - rows), (0, 0)))

    dtype_bytes = jnp.dtype(x.dtype).itemsize
    bytes_per_row = lane * dtype_bytes
    tile_n = max(pack, (target_block_bytes // bytes_per_row) // pack * pack)
    tile_n = min(tile_n, rows_padded)

    # v7x megacore: give large problems several grid steps so the single
    # "parallel" axis actually splits across both TensorCores.
    total_bytes = rows_padded * bytes_per_row
    if total_bytes >= 2 * (1 << 20):
        quarter = max(pack, (rows_padded // 4) // pack * pack)
        tile_n = min(tile_n, quarter)

    # Prefer a tile_n that divides rows_padded so the last block is not a
    # ragged, masked store; only accept divisors >= half the target tile.
    if rows_padded % tile_n != 0:
        units = rows_padded // pack
        t_units = tile_n // pack
        for d in range(t_units, max(t_units // 2, 1) - 1, -1):
            if units % d == 0:
                tile_n = d * pack
                break

    grid_n = pl.cdiv(rows_padded, tile_n)

    # Resident slope block: full (pack, lane) sublane tile, constant index_map.
    slope_lane = jnp.broadcast_to(slope_vec.reshape(1, lane), (pack, lane))

    out = pl.pallas_call(
        functools.partial(_learnable_sigmoid_kernel,
                          beta=float(beta), compute_dtype=compute_dtype),
        out_shape=jax.ShapeDtypeStruct((rows_padded, lane), x.dtype),
        grid_spec=pltpu.PrefetchScalarGridSpec(
            num_scalar_prefetch=0,
            grid=(grid_n,),
            in_specs=[
                pl.BlockSpec((tile_n, lane), lambda i: (i, 0)),  # streamed x
                pl.BlockSpec((pack, lane), lambda i: (0, 0)),    # resident slope
            ],
            out_specs=pl.BlockSpec((tile_n, lane), lambda i: (i, 0)),
        ),
        compiler_params=pltpu.CompilerParams(
            dimension_semantics=("parallel",),
            vmem_limit_bytes=48 * 1024 * 1024,
        ),
    )(x_lane, slope_lane)

    # ---- Undo padding / lane packing ---------------------------------------
    out = out[:rows]
    if group > 1:
        out = out.reshape(rows * group, f)[:n]
    elif lane != f:
        out = out[:, :f]
    return out.reshape(orig_shape)


if __name__ == "__main__":
    key = jax.random.PRNGKey(0)
    batch, seq, in_features = 2, 8, 32

    kx, ks = jax.random.split(key)
    x = jax.random.normal(kx, (batch, seq, in_features), dtype=jnp.float32)
    # Random slope (the module's init is ones(in_features)) to exercise the
    # lane-packed broadcast.
    slope = jax.random.normal(ks, (in_features,), dtype=jnp.float32)

    # beta == 1.0 path (nn.Module default).
    out1 = jax.block_until_ready(learnable_sigmoid(x, slope, beta=1.0))
    ref1 = 1.0 * jax.nn.sigmoid(slope * x)
    assert out1.shape == x.shape
    assert jnp.allclose(out1, ref1, atol=1e-5, rtol=1e-5)

    # beta != 1.0 path.
    out2 = jax.block_until_ready(learnable_sigmoid(x, slope, beta=0.5))
    ref2 = 0.5 * jax.nn.sigmoid(slope * x)
    assert jnp.allclose(out2, ref2, atol=1e-5, rtol=1e-5)

    print("KERNEL_OK")
</pallas_src>

<mosaic_0001>
module attributes {stable_mosaic.version = 11 : i64} {
  func.func @_learnable_sigmoid_kernel(%arg0: i32, %arg1: memref<8x128xf32, #tpu.memory_space<vmem>>, %arg2: memref<8x128xf32, #tpu.memory_space<vmem>>, %arg3: memref<8x128xf32, #tpu.memory_space<vmem>>) attributes {dimension_semantics = [#tpu.dimension_semantics<parallel>], iteration_bounds = array<i64: 1>, scalar_prefetch = 0 : i64, scratch_operands = 0 : i64, tpu.core_type = #tpu.core_type<tc>, window_params = [{transform_indices = @transform_0, window_bounds = array<i64: 8, 128>}, {pipeline_mode = #tpu.pipeline_mode<synchronous>, transform_indices = @transform_1, window_bounds = array<i64: 8, 128>}, {transform_indices = @transform_2, window_bounds = array<i64: 8, 128>}]} {
    %c0 = arith.constant 0 : index
    %c0_0 = arith.constant 0 : index
    %0 = vector.load %arg1[%c0, %c0_0] : memref<8x128xf32, #tpu.memory_space<vmem>>, vector<8x128xf32>
    %c0_1 = arith.constant 0 : index
    %c0_2 = arith.constant 0 : index
    %1 = vector.load %arg2[%c0_1, %c0_2] : memref<8x128xf32, #tpu.memory_space<vmem>>, vector<8x128xf32>
    %2 = vector.shape_cast %0 : vector<8x128xf32> to vector<1x8x128xf32>
    %3 = vector.shape_cast %1 : vector<8x128xf32> to vector<1x8x128xf32>
    %4 = arith.mulf %2, %3 : vector<1x8x128xf32>
    %cst = arith.constant 5.000000e-01 : f32
    %5 = vector.broadcast %cst : f32 to vector<1x8x128xf32>
    %6 = arith.mulf %5, %4 : vector<1x8x128xf32>
    %7 = math.tanh %6 : vector<1x8x128xf32>
    %cst_3 = arith.constant 5.000000e-01 : f32
    %8 = vector.broadcast %cst_3 : f32 to vector<1x8x128xf32>
    %9 = arith.mulf %8, %7 : vector<1x8x128xf32>
    %cst_4 = arith.constant 5.000000e-01 : f32
    %10 = vector.broadcast %cst_4 : f32 to vector<1x8x128xf32>
    %11 = arith.addf %9, %10 : vector<1x8x128xf32>
    %12 = vector.shape_cast %11 : vector<1x8x128xf32> to vector<8x128xf32>
    %c0_5 = arith.constant 0 : index
    %c0_6 = arith.constant 0 : index
    %13 = vector.load %arg3[%c0_5, %c0_6] : memref<8x128xf32, #tpu.memory_space<vmem>>, vector<8x128xf32>
    tpu.vector_store %arg3[%c0_5, %c0_6], %12 {strides = array<i32>} : memref<8x128xf32, #tpu.memory_space<vmem>>, vector<8x128xf32>,
    return
  }
  func.func @transform_0(%arg0: i32) -> (i32, i32) {
    %c0_i32 = arith.constant 0 : i32
    %c0_i32_0 = arith.constant 0 : i32
    return %arg0, %c0_i32 : i32, i32
  }
  func.func @transform_1(%arg0: i32) -> (i32, i32) {
    %c0_i32 = arith.constant 0 : i32
    %c0_i32_0 = arith.constant 0 : i32
    %c0_i32_1 = arith.constant 0 : i32
    return %c0_i32, %c0_i32_0 : i32, i32
  }
  func.func @transform_2(%arg0: i32) -> (i32, i32) {
    %c0_i32 = arith.constant 0 : i32
    %c0_i32_0 = arith.constant 0 : i32
    return %arg0, %c0_i32 : i32, i32
  }
}

</mosaic_0001>

<bundles_post_ra>
// kernel: tpu_custom_call.1
= control target key start
LH: loop header
LB: loop body
LE: loop exit
PB: predicated region body
PF: predicated region fallthrough
CT: control target
= control target key end

     0   :  { %7 = vsyncpa [#allocation3], 0  ;;  %s191_s0 = inlined_call_operand.hbm [shape: f32[8,128], index: 0, kind: input, shape index: {}]   ;;  %s192_s1 = inlined_call_operand.hbm [shape: f32[8,128], index: 1, kind: input, shape index: {}]   ;;  %s193_s2 = inlined_call_operand.hbm [shape: f32[8,128], index: 2, kind: output, shape index: {}]  }
   0x1   :  { %8 = vsyncpa [#allocation6], 0 }
   0x2   :  { %9 = vsyncpa [#allocation4], 0  ;;  %s137_s9 = smov [#allocation2]   ;;  %s138_s11 = smov [#allocation5]  }
   0x3   :  { %s16_s10 = sshll.u32 %s137_s9, 4  ;;  %s26_s12 = sshll.u32 %s138_s11, 4  ;;  %s17_s10 = int_to_ptr.vmem [resolvable:$true] %s16_s10  ;;  %s27_s12 = int_to_ptr.vmem [resolvable:$true] %s26_s12 }
   0x4   :  { %s65_s15 = scalar_lea.hbm %s191_s0, 128 }
   0x5   :  { %p66_p0 = scmp.ne.s32.totalorder %s191_s0, %s65_s15  ;;  %p69_p1 = scmp.lt.u32.totalorder %s65_s15, %s191_s0 }
   0x7   :  { %p71_p2 = pnand %p69_p1, %p66_p0 }
   0x9   :  { %74 = shalt.err (!%p71_p2)
}
   0xa   :  { %s75_s20 = scalar_lea.vmem %s17_s10, 128  ;;  %p80_p4 = scmp.lt.s32.totalorder %s17_s10, %s17_s10 }
   0xb   :  { %p76_p3 = scmp.ne.s32.totalorder %s17_s10, %s75_s20  ;;  %p81_p5 = scmp.lt.s32.totalorder %s75_s20, %s75_s20 }
   0xd   :  { %p82_p6 = por %p81_p5, %p80_p4 }
   0xf   :  { %p83_p7 = pnand %p82_p6, %p76_p3 }
  0x11   :  { %86 = shalt.err (!%p83_p7)
}
  0x12   :  { %19 = dma.hbm_to_vmem [thread:$0]  %s191_s0, 128, %s17_s10, [#allocation3]  }
  0x13   :  { %s87_s25 = scalar_lea.hbm %s192_s1, 128 }
  0x14   :  { %p88_p8 = scmp.ne.s32.totalorder %s192_s1, %s87_s25  ;;  %p91_p9 = scmp.lt.u32.totalorder %s87_s25, %s192_s1 }
  0x16   :  { %p93_p10 = pnand %p91_p9, %p88_p8 }
  0x18   :  { %96 = shalt.err (!%p93_p10)
}
  0x19   :  { %s97_s30 = scalar_lea.vmem %s27_s12, 128  ;;  %p102_p12 = scmp.lt.s32.totalorder %s27_s12, %s27_s12 }
  0x1a   :  { %p98_p11 = scmp.ne.s32.totalorder %s27_s12, %s97_s30  ;;  %p103_p13 = scmp.lt.s32.totalorder %s97_s30, %s97_s30 }
  0x1c   :  { %p104_p0 = por %p103_p13, %p102_p12 }
  0x1e   :  { %p105_p1 = pnand %p104_p0, %p98_p11 }
  0x20   :  { %108 = shalt.err (!%p105_p1)
}
  0x21   :  { %29 = dma.hbm_to_vmem [thread:$0]  %s192_s1, 128, %s27_s12, [#allocation6]  }
  0x22   :  { %131 = dma.done.wait [#allocation3], 128  }
  0x23   :  { %132 = vsyncadd [#allocation3], 4294967168 }
  0x24   :  { %133 = dma.done.wait [#allocation6], 128  }
  0x25   :  { %134 = vsyncadd [#allocation6], 4294967168  ;;  %v36_v0 = vld [vmem:[#allocation2] sm:$0xff]  ;;  %v37_v1 = vld [vmem:[#allocation5] sm:$0xff]  ;;  %s139_s4 = smov [#allocation7]  }
  0x26   :  { %v38_v2 = vmul.f32 %v37_v1, %v36_v0  ;;  %s50_s5 = sshll.u32 %s139_s4, 4  ;;  %s51_s5 = int_to_ptr.vmem [resolvable:$true] %s50_s5 }
  0x27   :  { %s109_s6 = scalar_lea.vmem %s51_s5, 128  ;;  %p114_p3 = scmp.lt.s32.totalorder %s51_s5, %s51_s5 }
  0x28   :  { %v39_v3 = vmul.f32 0.5, %v38_v2  ;;  %p110_p2 = scmp.ne.s32.totalorder %s51_s5, %s109_s6  ;;  %p115_p4 = scmp.lt.s32.totalorder %s109_s6, %s109_s6 }
  0x2a   :  { %63 = vtanh.f32 %v39_v3  ;;  %p116_p5 = por %p115_p4, %p114_p3 }
  0x2c   :  { %p117_p6 = pnand %p116_p5, %p110_p2 }
  0x34   :  { %v64_v4 = vpop.eup %63 }
  0x35   :  { %v41_v5 = vmul.f32 0.5, %v64_v4 }
  0x37   :  { %v42_v6 = vadd.f32 0.5, %v41_v5 }
  0x39   :  { %43 = vst [vmem:[#allocation7] sm:$0xff] %v42_v6 }
  0x3a   :  { %120 = shalt.err (!%p117_p6)
}
  0x3b   :  { %s121_s8 = scalar_lea.hbm %s193_s2, 128 }
  0x3c   :  { %p122_p7 = scmp.ne.s32.totalorder %s193_s2, %s121_s8  ;;  %p125_p8 = scmp.lt.u32.totalorder %s121_s8, %s193_s2 }
  0x3e   :  { %p127_p9 = pnand %p125_p8, %p122_p7 }
  0x40   :  { %130 = shalt.err (!%p127_p9)
}
  0x41   :  { %53 = dma.vmem_to_hbm [thread:$0]  %s51_s5, 128, %s193_s2, [#allocation4]  }
  0x42   :  { %135 = dma.done.wait [#allocation4], 128  }
  0x43   :  { %136 = vsyncadd [#allocation4], 4294967168 }
  0x44   :  { %57 = vsyncpa [#allocation3], 1 }
  0x45   :  { %58 = vsyncpa [#allocation6], 1 }
  0x46   :  { %59 = vsyncpa [#allocation4], 1 }

</bundles_post_ra>
